<compile_context>
chip_gen: v6e
topology: v6e:2x2x1
jax: 0.10.0
libtpu: 0.0.40
codegen_flags: <defaults>
</compile_context>

<pallas_src>
import jax
import jax.numpy as jnp
from jax.experimental import pallas as pl
from jax.experimental.pallas import tpu as pltpu


# ----------------------------- Pallas kernel --------------------------------

def ncf_mlp_kernel(u_ref, t_ref, w1u_ref, w1t_ref, b1_ref,
                   w2_ref, b2_ref, w3_ref, b3_ref, o_ref):
    """One batch tile of the NCF MLP.

    u_ref / t_ref: (TB, E) bf16 embedding rows.  Output o_ref: (1, TB) f32,
    lane-dense along the batch.
    """
    u = u_ref[...]
    t = t_ref[...]

    # Layer 1: concat fused as split matmul; bf16 MXU inputs, f32 accumulation.
    h1 = jnp.dot(u, w1u_ref[...], preferred_element_type=jnp.float32)
    h1 = h1 + jnp.dot(t, w1t_ref[...], preferred_element_type=jnp.float32)
    h1 = h1 + b1_ref[...]                       # (1, H1) f32 bias broadcast
    h1 = jnp.maximum(h1, 0.0)                   # ReLU (f32 VPU, v5e-safe)

    # Layer 2: h1 rounded to bf16 for the MXU (deliberate precision divergence
    # vs. the f32 reference, covered by the test tolerance).
    h2 = jnp.dot(h1.astype(jnp.bfloat16), w2_ref[...],
                 preferred_element_type=jnp.float32)
    h2 = h2 + b2_ref[...]
    h2 = jnp.maximum(h2, 0.0)                   # (TB, H2) f32

    # Layer 3 (Dout=1): contract H2 so the batch lands on lanes -> (1, TB).
    # This makes the output store an unmasked, lane-dense vst.
    out = jax.lax.dot_general(w3_ref[...], h2,
                              dimension_numbers=(((1,), (1,)), ((), ())),
                              preferred_element_type=jnp.float32)   # (1, TB)
    out = out + b3_ref[0, 0]                    # scalar bias from SMEM
    o_ref[...] = out.astype(o_ref.dtype)


def ncf_mlp_pallas(u, t, w1u, w1t, b1, w2, b2, w3_row, b3, *, tile_b):
    """u, t: (B, E) bf16 embedding rows -> (1, B) f32 MLP output (lane-dense)."""
    B, E = u.shape
    assert B % tile_b == 0, "pad batch upstream to a multiple of tile_b"
    assert tile_b % 128 == 0 or tile_b == B, "tile_b must be 128-aligned"
    H1 = w1u.shape[1]
    H2 = w2.shape[1]
    n_tiles = B // tile_b
    full2 = lambda i: (0, 0)

    def emb_spec():
        # Triple-buffer the streamed embedding tiles when the grid is long
        # enough to benefit (per-tile compute is tiny, so DMA latency can be
        # the exposed cost).  Weights/biases keep the default (resident).
        if n_tiles >= 3:
            return pl.BlockSpec((tile_b, E), lambda i: (i, 0),
                                pipeline_mode=pl.Buffered(3))
        return pl.BlockSpec((tile_b, E), lambda i: (i, 0))

    # Advisory cost estimate so XLA overlaps the surrounding gather/pad/slice.
    flops = 2 * B * (2 * E * H1 + H1 * H2 + H2)
    bytes_accessed = (2 * B * E * 2            # two bf16 embedding inputs
                      + B * 4                  # f32 output row
                      + (2 * E * H1 + H1 * H2) * 2   # bf16 weights
                      + (H1 + 2 * H2 + 1) * 4)       # f32 biases + w3 row

    return pl.pallas_call(
        ncf_mlp_kernel,
        out_shape=jax.ShapeDtypeStruct((1, B), jnp.float32),
        grid_spec=pltpu.PrefetchScalarGridSpec(
            num_scalar_prefetch=0,
            grid=(n_tiles,),
            in_specs=[
                emb_spec(),                                   # user emb tile
                emb_spec(),                                   # track emb tile
                pl.BlockSpec((E, H1), full2),                 # W1 (user half)
                pl.BlockSpec((E, H1), full2),                 # W1 (track half)
                pl.BlockSpec((1, H1), full2),                 # b1 (f32)
                pl.BlockSpec((H1, H2), full2),                # W2
                pl.BlockSpec((1, H2), full2),                 # b2 (f32)
                pl.BlockSpec((1, H2), full2),                 # w3 as a row (f32)
                pl.BlockSpec(memory_space=pltpu.MemorySpace.SMEM),  # b3 scalar
            ],
            out_specs=pl.BlockSpec((1, tile_b), lambda i: (0, i)),
        ),
        compiler_params=pltpu.CompilerParams(
            # Batch axis is embarrassingly parallel (megacore / v7x 2-TC
            # sharding once the real batch gives the grid >= 2 steps).
            dimension_semantics=("parallel",),
            # Explicit headroom: triple-buffered (tile_b, E) bf16 tiles are
            # lane-padded to 128 lanes in VMEM; at tile_b=8192 that is ~12 MiB
            # total, comfortably under this cap on v5e/v6e/v7x.
            vmem_limit_bytes=32 * 1024 * 1024),
        cost_estimate=pl.CostEstimate(flops=flops, transcendentals=0,
                                      bytes_accessed=bytes_accessed),
    )(u, t, w1u, w1t, b1, w2, b2, w3_row, b3)


# ----------------------------- model wrapper --------------------------------

def _round_up(x, m):
    return ((x + m - 1) // m) * m


def init_ncf_params(key, num_users, num_tracks, embedding_dim=32):
    ks = jax.random.split(key, 8)
    E = embedding_dim
    w1 = jax.random.normal(ks[2], (2 * E, 64), jnp.float32) * 0.1
    return {
        # Storage / MXU-input precision: bf16. Biases & final projection: f32.
        "user_emb": jax.random.normal(ks[0], (num_users, E), jnp.float32).astype(jnp.bfloat16),
        "track_emb": jax.random.normal(ks[1], (num_tracks, E), jnp.float32).astype(jnp.bfloat16),
        "w1u": w1[:E].astype(jnp.bfloat16),                      # (E, 64)
        "w1t": w1[E:].astype(jnp.bfloat16),                      # (E, 64)
        "b1": jax.random.normal(ks[3], (1, 64), jnp.float32) * 0.1,
        "w2": (jax.random.normal(ks[4], (64, 32), jnp.float32) * 0.1).astype(jnp.bfloat16),
        "b2": jax.random.normal(ks[5], (1, 32), jnp.float32) * 0.1,
        "w3_row": (jax.random.normal(ks[6], (32, 1), jnp.float32) * 0.1).T,  # (1, 32) f32
        "b3": jax.random.normal(ks[7], (1, 1), jnp.float32) * 0.1,
    }


def neural_cf_forward(params, user_idx, track_idx, *, tile_b=4096):
    """out[i] = MLP(concat(user_emb[user_idx[i]], track_emb[track_idx[i]]))."""
    B = user_idx.shape[0]
    # Large default tile amortizes the ~0.35us per-grid-step overhead; shrink
    # (128-aligned, for the lane-dense output block) for small batches so the
    # padding waste stays bounded.
    tb = min(tile_b, _round_up(B, 128))
    b_pad = _round_up(B, tb)
    pad = b_pad - B
    uidx = jnp.pad(user_idx, (0, pad))   # padded rows gather row 0 (valid) and
    tidx = jnp.pad(track_idx, (0, pad))  # are sliced off; never feed the padded
                                         # output into a batch-wide reduction.

    # Embedding row gather stays in XLA for now (see TODO at top of file).
    user_e = jnp.take(params["user_emb"], uidx, axis=0)    # (B_pad, E) bf16
    track_e = jnp.take(params["track_emb"], tidx, axis=0)  # (B_pad, E) bf16

    out = ncf_mlp_pallas(user_e, track_e,
                         params["w1u"], params["w1t"], params["b1"],
                         params["w2"], params["b2"],
                         params["w3_row"], params["b3"],
                         tile_b=tb)                         # (1, B_pad)
    return out[0, :B]                                       # squeeze(-1) -> (B,)


def neural_cf_reference(params, user_idx, track_idx):
    # Pure-JAX f32 reference (same bf16-stored params, upcast to f32).
    user_e = jnp.take(params["user_emb"].astype(jnp.float32), user_idx, axis=0)
    track_e = jnp.take(params["track_emb"].astype(jnp.float32), track_idx, axis=0)
    x = jnp.concatenate([user_e, track_e], axis=-1)
    w1 = jnp.concatenate([params["w1u"], params["w1t"]], axis=0).astype(jnp.float32)
    h1 = jnp.maximum(x @ w1 + params["b1"], 0.0)
    h2 = jnp.maximum(h1 @ params["w2"].astype(jnp.float32) + params["b2"], 0.0)
    out = h2 @ params["w3_row"].T + params["b3"]
    return out[:, 0]


# --------------------------------- main --------------------------------------

if __name__ == "__main__":
    key = jax.random.PRNGKey(0)
    num_users, num_tracks, embedding_dim = 16, 20, 32

    kp, ku, kt, ku2, kt2 = jax.random.split(key, 5)
    params = init_ncf_params(kp, num_users, num_tracks, embedding_dim)

    # Small-batch check (matches the PyTorch module's typical usage).
    batch = 8
    user_idx = jax.random.randint(ku, (batch,), 0, num_users, dtype=jnp.int32)
    track_idx = jax.random.randint(kt, (batch,), 0, num_tracks, dtype=jnp.int32)
    out = jax.block_until_ready(neural_cf_forward(params, user_idx, track_idx))
    ref = neural_cf_reference(params, user_idx, track_idx)
    assert out.shape == (batch,)
    # bf16 matmul-input precision (f32 accumulation) -> relaxed tolerance.
    assert jnp.allclose(out, ref, atol=1e-2, rtol=1e-2), "small-batch mismatch"

    # Multi-tile check: exercises the multi-step grid, lane-dense output
    # indexing and the Buffered(3) embedding-tile pipeline.
    batch2 = 300
    user_idx2 = jax.random.randint(ku2, (batch2,), 0, num_users, dtype=jnp.int32)
    track_idx2 = jax.random.randint(kt2, (batch2,), 0, num_tracks, dtype=jnp.int32)
    out2 = jax.block_until_ready(
        neural_cf_forward(params, user_idx2, track_idx2, tile_b=128))
    ref2 = neural_cf_reference(params, user_idx2, track_idx2)
    assert out2.shape == (batch2,)
    assert jnp.allclose(out2, ref2, atol=1e-2, rtol=1e-2), "multi-tile mismatch"

    print("KERNEL_OK")
</pallas_src>

<mosaic_0001>
module attributes {stable_mosaic.version = 11 : i64} {
  func.func @ncf_mlp_kernel(%arg0: i32, %arg1: memref<128x32xbf16, #tpu.memory_space<vmem>>, %arg2: memref<128x32xbf16, #tpu.memory_space<vmem>>, %arg3: memref<32x64xbf16, #tpu.memory_space<vmem>>, %arg4: memref<32x64xbf16, #tpu.memory_space<vmem>>, %arg5: memref<1x64xf32, #tpu.memory_space<vmem>>, %arg6: memref<64x32xbf16, #tpu.memory_space<vmem>>, %arg7: memref<1x32xf32, #tpu.memory_space<vmem>>, %arg8: memref<1x32xf32, #tpu.memory_space<vmem>>, %arg9: memref<1x1xf32, #tpu.memory_space<smem>>, %arg10: memref<1x128xf32, #tpu.memory_space<vmem>>) attributes {dimension_semantics = [#tpu.dimension_semantics<parallel>], iteration_bounds = array<i64: 1>, scalar_prefetch = 0 : i64, scratch_operands = 0 : i64, tpu.core_type = #tpu.core_type<tc>, window_params = [{transform_indices = @transform_0, window_bounds = array<i64: 128, 32>}, {transform_indices = @transform_1, window_bounds = array<i64: 128, 32>}, {pipeline_mode = #tpu.pipeline_mode<synchronous>, transform_indices = @transform_2, window_bounds = array<i64: 32, 64>}, {pipeline_mode = #tpu.pipeline_mode<synchronous>, transform_indices = @transform_3, window_bounds = array<i64: 32, 64>}, {pipeline_mode = #tpu.pipeline_mode<synchronous>, transform_indices = @transform_4, window_bounds = array<i64: 1, 64>}, {pipeline_mode = #tpu.pipeline_mode<synchronous>, transform_indices = @transform_5, window_bounds = array<i64: 64, 32>}, {pipeline_mode = #tpu.pipeline_mode<synchronous>, transform_indices = @transform_6, window_bounds = array<i64: 1, 32>}, {pipeline_mode = #tpu.pipeline_mode<synchronous>, transform_indices = @transform_7, window_bounds = array<i64: 1, 32>}, {transform_indices = @transform_8, window_bounds = array<i64: 1, 1>}, {transform_indices = @transform_9, window_bounds = array<i64: 1, 128>}]} {
    %c0 = arith.constant 0 : index
    %c0_0 = arith.constant 0 : index
    %0 = vector.load %arg1[%c0, %c0_0] : memref<128x32xbf16, #tpu.memory_space<vmem>>, vector<128x32xbf16>
    %c0_1 = arith.constant 0 : index
    %c0_2 = arith.constant 0 : index
    %1 = vector.load %arg2[%c0_1, %c0_2] : memref<128x32xbf16, #tpu.memory_space<vmem>>, vector<128x32xbf16>
    %c0_3 = arith.constant 0 : index
    %c0_4 = arith.constant 0 : index
    %2 = vector.load %arg3[%c0_3, %c0_4] : memref<32x64xbf16, #tpu.memory_space<vmem>>, vector<32x64xbf16>
    %cst = arith.constant dense<0.000000e+00> : vector<128x64xf32>
    %3 = tpu.matmul %0, %2, %cst {dimension_numbers = #tpu.dot_dimension_numbers<[1], [0], [0], [1], [0, 0, 1, 1], [], []>} : vector<128x32xbf16>, vector<32x64xbf16>, vector<128x64xf32> -> vector<128x64xf32>
    %c0_5 = arith.constant 0 : index
    %c0_6 = arith.constant 0 : index
    %4 = vector.load %arg4[%c0_5, %c0_6] : memref<32x64xbf16, #tpu.memory_space<vmem>>, vector<32x64xbf16>
    %cst_7 = arith.constant dense<0.000000e+00> : vector<128x64xf32>
    %5 = tpu.matmul %1, %4, %cst_7 {dimension_numbers = #tpu.dot_dimension_numbers<[1], [0], [0], [1], [0, 0, 1, 1], [], []>} : vector<128x32xbf16>, vector<32x64xbf16>, vector<128x64xf32> -> vector<128x64xf32>
    %6 = arith.addf %3, %5 : vector<128x64xf32>
    %c0_8 = arith.constant 0 : index
    %c0_9 = arith.constant 0 : index
    %7 = vector.load %arg5[%c0_8, %c0_9] : memref<1x64xf32, #tpu.memory_space<vmem>>, vector<1x64xf32>
    %8 = vector.broadcast %7 : vector<1x64xf32> to vector<128x64xf32>
    %9 = arith.addf %6, %8 : vector<128x64xf32>
    %cst_10 = arith.constant 0.000000e+00 : f32
    %10 = vector.broadcast %cst_10 : f32 to vector<128x64xf32>
    %11 = arith.maximumf %9, %10 : vector<128x64xf32>
    %12 = arith.truncf %11 : vector<128x64xf32> to vector<128x64xbf16>
    %c0_11 = arith.constant 0 : index
    %c0_12 = arith.constant 0 : index
    %13 = vector.load %arg6[%c0_11, %c0_12] : memref<64x32xbf16, #tpu.memory_space<vmem>>, vector<64x32xbf16>
    %cst_13 = arith.constant dense<0.000000e+00> : vector<128x32xf32>
    %14 = tpu.matmul %12, %13, %cst_13 {dimension_numbers = #tpu.dot_dimension_numbers<[1], [0], [0], [1], [0, 0, 1, 1], [], []>} : vector<128x64xbf16>, vector<64x32xbf16>, vector<128x32xf32> -> vector<128x32xf32>
    %c0_14 = arith.constant 0 : index
    %c0_15 = arith.constant 0 : index
    %15 = vector.load %arg7[%c0_14, %c0_15] : memref<1x32xf32, #tpu.memory_space<vmem>>, vector<1x32xf32>
    %16 = vector.broadcast %15 : vector<1x32xf32> to vector<128x32xf32>
    %17 = arith.addf %14, %16 : vector<128x32xf32>
    %cst_16 = arith.constant 0.000000e+00 : f32
    %18 = vector.broadcast %cst_16 : f32 to vector<128x32xf32>
    %19 = arith.maximumf %17, %18 : vector<128x32xf32>
    %c0_17 = arith.constant 0 : index
    %c0_18 = arith.constant 0 : index
    %20 = vector.load %arg8[%c0_17, %c0_18] : memref<1x32xf32, #tpu.memory_space<vmem>>, vector<1x32xf32>
    %cst_19 = arith.constant dense<0.000000e+00> : vector<1x128xf32>
    %21 = tpu.matmul %20, %19, %cst_19 {dimension_numbers = #tpu.dot_dimension_numbers<[1], [1], [0], [0], [0, 0, 1, 0], [], []>} : vector<1x32xf32>, vector<128x32xf32>, vector<1x128xf32> -> vector<1x128xf32>
    %c0_20 = arith.constant 0 : index
    %c0_21 = arith.constant 0 : index
    %22 = memref.load %arg9[%c0_20, %c0_21] : memref<1x1xf32, #tpu.memory_space<smem>>
    %23 = vector.broadcast %22 : f32 to vector<1x128xf32>
    %24 = arith.addf %21, %23 : vector<1x128xf32>
    %c0_22 = arith.constant 0 : index
    %c0_23 = arith.constant 0 : index
    %25 = vector.load %arg10[%c0_22, %c0_23] : memref<1x128xf32, #tpu.memory_space<vmem>>, vector<1x128xf32>
    tpu.vector_store %arg10[%c0_22, %c0_23], %24 {strides = array<i32>} : memref<1x128xf32, #tpu.memory_space<vmem>>, vector<1x128xf32>,
    return
  }
  func.func @transform_0(%arg0: i32) -> (i32, i32) {
    %c0_i32 = arith.constant 0 : i32
    %c0_i32_0 = arith.constant 0 : i32
    return %arg0, %c0_i32 : i32, i32
  }
  func.func @transform_1(%arg0: i32) -> (i32, i32) {
    %c0_i32 = arith.constant 0 : i32
    %c0_i32_0 = arith.constant 0 : i32
    return %arg0, %c0_i32 : i32, i32
  }
  func.func @transform_2(%arg0: i32) -> (i32, i32) {
    %c0_i32 = arith.constant 0 : i32
    %c0_i32_0 = arith.constant 0 : i32
    %c0_i32_1 = arith.constant 0 : i32
    return %c0_i32, %c0_i32_0 : i32, i32
  }
  func.func @transform_3(%arg0: i32) -> (i32, i32) {
    %c0_i32 = arith.constant 0 : i32
    %c0_i32_0 = arith.constant 0 : i32
    %c0_i32_1 = arith.constant 0 : i32
    return %c0_i32, %c0_i32_0 : i32, i32
  }
  func.func @transform_4(%arg0: i32) -> (i32, i32) {
    %c0_i32 = arith.constant 0 : i32
    %c0_i32_0 = arith.constant 0 : i32
    %c0_i32_1 = arith.constant 0 : i32
    return %c0_i32, %c0_i32_0 : i32, i32
  }
  func.func @transform_5(%arg0: i32) -> (i32, i32) {
    %c0_i32 = arith.constant 0 : i32
    %c0_i32_0 = arith.constant 0 : i32
    %c0_i32_1 = arith.constant 0 : i32
    return %c0_i32, %c0_i32_0 : i32, i32
  }
  func.func @transform_6(%arg0: i32) -> (i32, i32) {
    %c0_i32 = arith.constant 0 : i32
    %c0_i32_0 = arith.constant 0 : i32
    %c0_i32_1 = arith.constant 0 : i32
    return %c0_i32, %c0_i32_0 : i32, i32
  }
  func.func @transform_7(%arg0: i32) -> (i32, i32) {
    %c0_i32 = arith.constant 0 : i32
    %c0_i32_0 = arith.constant 0 : i32
    %c0_i32_1 = arith.constant 0 : i32
    return %c0_i32, %c0_i32_0 : i32, i32
  }
  func.func @transform_8(%arg0: i32) -> (i32, i32) {
    %c0_i32 = arith.constant 0 : i32
    %c0_i32_0 = arith.constant 0 : i32
    %c0_i32_1 = arith.constant 0 : i32
    return %c0_i32, %c0_i32_0 : i32, i32
  }
  func.func @transform_9(%arg0: i32) -> (i32, i32) {
    %c0_i32 = arith.constant 0 : i32
    %c0_i32_0 = arith.constant 0 : i32
    return %c0_i32, %arg0 : i32, i32
  }
}

</mosaic_0001>

<bundles_post_ra>
// kernel: tpu_custom_call.1
= control target key start
LH: loop header
LB: loop body
LE: loop exit
PB: predicated region body
PF: predicated region fallthrough
CT: control target
= control target key end

     0   :  { %vm127_vm0 = vcmask 261120   ;;  %s1274_s0 = inlined_call_operand.vmem [shape: bf16[128,32], index: 0, kind: input, shape index: {}]   ;;  %s1275_s1 = inlined_call_operand.vmem [shape: bf16[128,32], index: 1, kind: input, shape index: {}]   ;;  %s1276_s2 = inlined_call_operand.vmem [shape: bf16[32,64], index: 2, kind: input, shape index: {}]   ;;  %s1277_s3 = inlined_call_operand.vmem [shape: bf16[32,64], index: 3, kind: input, shape index: {}]   ;;  %s1278_s4 = inlined_call_operand.vmem [shape: f32[1,64], index: 4, kind: input, shape index: {}]   ;;  %s1279_s5 = inlined_call_operand.vmem [shape: bf16[64,32], index: 5, kind: input, shape index: {}]   ;;  %s1280_s6 = inlined_call_operand.vmem [shape: f32[1,32], index: 6, kind: input, shape index: {}]   ;;  %s1281_s7 = inlined_call_operand.vmem [shape: f32[1,32], index: 7, kind: input, shape index: {}]   ;;  %s1282_s8 = inlined_call_operand.<no memory space> [shape: f32[1,1], index: 8, kind: input, shape index: {}]   ;;  %s1283_s9 = inlined_call_operand.hbm [shape: f32[1,128], index: 9, kind: output, shape index: {}]  }
   0x1   :  { %v1003_v0 = vld [vmem:[%s1277_s3 + $0x8] sm:$0xff]   ;;  %v1005_v2 = vld [vmem:[%s1277_s3] sm:$0xff]   ;;  %v1011_v8 = vld [vmem:[%s1275_s1 + $0x10] sm:$0xff]  }
   0x2   :  { %v1004_v1 = vld [vmem:[%s1276_s2 + $0x8] sm:$0xff]   ;;  %901 = vmatprep.subr.bf16.mxu0 %v1003_v0  ;;  %v1006_v3 = vld [vmem:[%s1276_s2] sm:$0xff]   ;;  %v1012_v9 = vld [vmem:[%s1274_s0 + $0x10] sm:$0xff]  }
   0x3   :  { %921 = vmatprep.subr.bf16.mxu1 %v1004_v1  ;;  %902 = vmatpush3.bf16.msra.mxu0 %v1003_v0  ;;  %v1007_v4 = vld [vmem:[%s1275_s1] sm:$0xff]   ;;  %v1009_v6 = vld [vmem:[%s1275_s1 + $0x8] sm:$0xff]   ;;  %v1013_v10 = vld [vmem:[%s1275_s1 + $0x18] sm:$0xff]  }
   0x4   :  { %922 = vmatpush3.bf16.msra.mxu1 %v1004_v1  ;;  %903 = vmatprep.subr.bf16.mxu0 %v1005_v2  ;;  %v1008_v5 = vld [vmem:[%s1274_s0] sm:$0xff]   ;;  %v1010_v7 = vld [vmem:[%s1274_s0 + $0x8] sm:$0xff]   ;;  %v1014_v11 = vld [vmem:[%s1274_s0 + $0x18] sm:$0xff]  }
   0x5   :  { %923 = vmatprep.subr.bf16.mxu1 %v1006_v3  ;;  %905 = vmatprep.mubr.msk.bf16.mxu0 %vm127_vm0, %v1007_v4  ;;  %v1015_v12 = vld [vmem:[%s1275_s1 + $0x20] sm:$0xff]   ;;  %v1017_v14 = vld [vmem:[%s1275_s1 + $0x28] sm:$0xff]   ;;  %v1023_v15 = vld [vmem:[%s1279_s5 + $0x18] sm:$0xff]  }
   0x6   :  { %925 = vmatprep.mubr.msk.bf16.mxu1 %vm127_vm0, %v1008_v5  ;;  %v1016_v13 = vld [vmem:[%s1274_s0 + $0x20] sm:$0xff]   ;;  %v1018_v16 = vld [vmem:[%s1274_s0 + $0x28] sm:$0xff]   ;;  %v1024_v17 = vld [vmem:[%s1279_s5 + $0x10] sm:$0xff]  }
   0x7   :  { %904 = vmatpush3.bf16.msra.mxu0 %v1005_v2  ;;  %v1019_v18 = vld [vmem:[%s1275_s1 + $0x30] sm:$0xff]  }
   0x8   :  { %924 = vmatpush3.bf16.msra.mxu1 %v1006_v3  ;;  %941 = vmatprep.subr.bf16.mxu0 %v1023_v15 }
   0xa   :  { %906 = vmatmul.mubr.msk.bf16.vlgmr.msra.gmra.mxu0 %vm127_vm0, %v1009_v6 }
   0xb   :  { %926 = vmatmul.mubr.msk.bf16.vlgmr.msra.gmra.mxu1 %vm127_vm0, %v1010_v7  ;;  %909 = vmatprep.mubr.msk.bf16.mxu0 %vm127_vm0, %v1011_v8 }
   0xc   :  { %929 = vmatprep.mubr.msk.bf16.mxu1 %vm127_vm0, %v1012_v9  ;;  %942 = vmatpush3.bf16.msra.mxu0 %v1023_v15 }
  0x12   :  { %910 = vmatmul.mubr.msk.bf16.gmra.mxu0 %vm127_vm0, %v1013_v10 }
  0x13   :  { %930 = vmatmul.mubr.msk.bf16.gmra.mxu1 %vm127_vm0, %v1014_v11  ;;  %913 = vmatprep.mubr.msk.bf16.mxu0 %vm127_vm0, %v1015_v12 }
  0x14   :  { %933 = vmatprep.mubr.msk.bf16.mxu1 %vm127_vm0, %v1016_v13 }
  0x15   :  { %15 = vsyncpa [#allocation4], 0  ;;  %v1020_v19 = vld [vmem:[%s1274_s0 + $0x30] sm:$0xff]   ;;  %943 = vmatprep.subr.bf16.mxu0 %v1024_v17  ;;  %v1025_v20 = vld [vmem:[%s1279_s5 + $0x8] sm:$0xff]   ;;  %vm508_vm1 = vcmask 523264   ;;  %vm1050_vm2 = vmmov 0  }
  0x16   :  { %944 = vmatpush3.bf16.msra.mxu0 %v1024_v17  ;;  %v1021_v21 = vld [vmem:[%s1275_s1 + $0x38] sm:$0xff]   ;;  %v1026_v23 = vld [vmem:[%s1279_s5] sm:$0xff]   ;;  %s1051_s14 = smov [#allocation3]  }
  0x17   :  { %945 = vmatprep.subr.bf16.mxu0 %v1025_v20  ;;  %v1022_v22 = vld [vmem:[%s1274_s0 + $0x38] sm:$0xff]   ;;  %v1193_v32 = vld [vmem:[%s1278_s4] ss:$0 sm:$0xff]  ;;  %s777_s15 = sshll.u32 %s1051_s14, 4  ;;  %s778_s15 = int_to_ptr.vmem [resolvable:$true] %s777_s15 }
  0x18   :  { %s1027_s16 = scalar_lea.vmem %s778_s15, 16  ;;  %s1031_s17 = scalar_lea.vmem %s778_s15, 32 }
  0x19   :  { %p1028_p0 = scmp.ne.s32.totalorder %s778_s15, %s1027_s16  ;;  %p1032_p1 = scmp.lt.s32.totalorder %s778_s15, %s778_s15 }
  0x1a   :  { %914 = vmatmul.mubr.msk.bf16.gmra.mxu0 %vm127_vm0, %v1017_v14  ;;  %p1033_p2 = scmp.lt.s32.totalorder %s1031_s17, %s1027_s16 }
  0x1b   :  { %934 = vmatmul.mubr.msk.bf16.gmra.mxu1 %vm127_vm0, %v1018_v16  ;;  %917 = vmatprep.mubr.msk.bf16.mxu0 %vm127_vm0, %v1019_v18 }
  0x1c   :  { %937 = vmatprep.mubr.msk.bf16.mxu1 %vm127_vm0, %v1020_v19  ;;  %946 = vmatpush3.bf16.msra.mxu0 %v1025_v20  ;;  %p1034_p3 = por %p1033_p2, %p1032_p1 }
  0x1d   :  { %947 = vmatprep.subr.bf16.mxu0 %v1026_v23 }
  0x1e   :  { %p1035_p4 = pnand %p1034_p3, %p1028_p0 }
  0x20   :  { %948 = vmatpush3.bf16.msra.mxu0 %v1026_v23 }
  0x22   :  { %918 = vmatmul.mubr.msk.bf16.gmra.mxu0 %vm127_vm0, %v1021_v21 }
  0x23   :  { %938 = vmatmul.mubr.msk.bf16.gmra.mxu1 %vm127_vm0, %v1022_v22 }
  0xca   :  { %v907_v24 = vpop.f32.mrf.mxu0 }
  0xcb   :  { %v927_v25 = vpop.f32.mrf.mxu1 }
  0xcc   :  { %v186_v26 = vpop.f32.mrf.mxu0  ;;  %v368_v30 = vadd.f32 %v927_v25, %v907_v24 }
  0xcd   :  { %v359_v27 = vpop.f32.mrf.mxu1 }
  0xce   :  { %v360_v28 = vadd.f32 %v359_v27, %v186_v26  ;;  %v908_v29 = vpop.f32.mrf.mxu0  ;;  %v431_v40 = vadd.f32 %v1193_v32, %v368_v30 }
  0xcf   :  { %v928_v31 = vpop.f32.mrf.mxu1 }
  0xd0   :  { %v371_v33 = vadd.f32 %v928_v31, %v908_v29  ;;  %v189_v34 = vpop.f32.mrf.mxu0  ;;  %v429_v36 = vadd.f32 %v1193_v32, %v360_v28  ;;  %v447_v50 = vmax.f32 %v431_v40, 0.0 }
  0xd1   :  { %v362_v35 = vpop.f32.mrf.mxu1 }
  0xd2   :  { %v432_v37 = vadd.f32 %v1193_v32, %v371_v33  ;;  %v363_v38 = vadd.f32 %v362_v35, %v189_v34  ;;  %v911_v39 = vpop.f32.mrf.mxu0  ;;  %v445_v46 = vmax.f32 %v429_v36, 0.0 }
  0xd3   :  { %v931_v41 = vpop.f32.mrf.mxu1 }
  0xd4   :  { %v430_v42 = vadd.f32 %v1193_v32, %v363_v38  ;;  %v202_v43 = vpop.f32.mrf.mxu0  ;;  %v448_v44 = vmax.f32 %v432_v37, 0.0  ;;  %v384_v51 = vadd.f32 %v931_v41, %v911_v39 }
  0xd5   :  { %v375_v45 = vpop.f32.mrf.mxu1 }
  0xd6   :  { %v446_v47 = vmax.f32 %v430_v42, 0.0  ;;  %v376_v48 = vadd.f32 %v375_v45, %v202_v43  ;;  %v912_v49 = vpop.f32.mrf.mxu0  ;;  %v462_v56 = vpack.c.bf16 %v448_v44, %v447_v50  ;;  %v435_v62 = vadd.f32 %v1193_v32, %v384_v51 }
  0xd7   :  { %v932_v52 = vpop.f32.mrf.mxu1  ;;  %v1049_v50 = vmov 0.0  }
  0xd8   :  { %v461_v53 = vpack.c.bf16 %v446_v47, %v445_v46  ;;  %v387_v54 = vadd.f32 %v932_v52, %v912_v49  ;;  %v205_v55 = vpop.f32.mrf.mxu0  ;;  %v433_v58 = vadd.f32 %v1193_v32, %v376_v48  ;;  %v451_v8 = vmax.f32 %v435_v62, 0.0  ;;  %965 = vmatprep.subr.mxu1 %v1049_v50  ;;  %997 = vmatprep.mubr.msk.f32.mxu1 %vm1050_vm2, %v1049_v50 }
  0xd9   :  { %v378_v57 = vpop.f32.mrf.mxu1 }
  0xda   :  { %v436_v59 = vadd.f32 %v1193_v32, %v387_v54  ;;  %v379_v60 = vadd.f32 %v378_v57, %v205_v55  ;;  %949 = vmatprep.mubr.msk.bf16.mxu0 %vm508_vm1, %v461_v53  ;;  %v915_v61 = vpop.f32.mrf.mxu0  ;;  %v449_v4 = vmax.f32 %v433_v58, 0.0 }
  0xdb   :  { %v935_v63 = vpop.f32.mrf.mxu1  ;;  %950 = vmatmul.mubr.msk.bf16.vlgmr.msra.gmra.mxu0 %vm508_vm1, %v462_v56 }
  0xdc   :  { %v434_v0 = vadd.f32 %v1193_v32, %v379_v60  ;;  %v218_v1 = vpop.f32.mrf.mxu0  ;;  %v452_v2 = vmax.f32 %v436_v59, 0.0  ;;  %v400_v9 = vadd.f32 %v935_v63, %v915_v61 }
  0xdd   :  { %v391_v3 = vpop.f32.mrf.mxu1 }
  0xde   :  { %v450_v5 = vmax.f32 %v434_v0, 0.0  ;;  %v392_v6 = vadd.f32 %v391_v3, %v218_v1  ;;  %v916_v7 = vpop.f32.mrf.mxu0  ;;  %v464_v14 = vpack.c.bf16 %v452_v2, %v451_v8  ;;  %v439_v20 = vadd.f32 %v1193_v32, %v400_v9  ;;  %v822_v0 = vld [vmem:[%s1280_s6] ss:$0 sm:$0xff] }
  0xdf   :  { %v936_v10 = vpop.f32.mrf.mxu1 }
  0xe0   :  { %v463_v11 = vpack.c.bf16 %v450_v5, %v449_v4  ;;  %v403_v12 = vadd.f32 %v936_v10, %v916_v7  ;;  %v221_v13 = vpop.f32.mrf.mxu0  ;;  %v437_v16 = vadd.f32 %v1193_v32, %v392_v6  ;;  %v455_v30 = vmax.f32 %v439_v20, 0.0 }
  0xe1   :  { %v394_v15 = vpop.f32.mrf.mxu1 }
  0xe2   :  { %v440_v17 = vadd.f32 %v1193_v32, %v403_v12  ;;  %v395_v18 = vadd.f32 %v394_v15, %v221_v13  ;;  %953 = vmatprep.mubr.msk.bf16.mxu0 %vm508_vm1, %v463_v11  ;;  %v919_v19 = vpop.f32.mrf.mxu0  ;;  %v453_v26 = vmax.f32 %v437_v16, 0.0 }
  0xe3   :  { %v939_v21 = vpop.f32.mrf.mxu1  ;;  %954 = vmatmul.mubr.msk.bf16.gmra.mxu0 %vm508_vm1, %v464_v14 }
  0xe4   :  { %v438_v22 = vadd.f32 %v1193_v32, %v395_v18  ;;  %v234_v23 = vpop.f32.mrf.mxu0  ;;  %v456_v24 = vmax.f32 %v440_v17, 0.0  ;;  %v416_v31 = vadd.f32 %v939_v21, %v919_v19 }
  0xe5   :  { %v407_v25 = vpop.f32.mrf.mxu1 }
  0xe6   :  { %v454_v27 = vmax.f32 %v438_v22, 0.0  ;;  %v408_v28 = vadd.f32 %v407_v25, %v234_v23  ;;  %v920_v29 = vpop.f32.mrf.mxu0  ;;  %v466_v37 = vpack.c.bf16 %v456_v24, %v455_v30  ;;  %v443_v42 = vadd.f32 %v1193_v32, %v416_v31 }
  0xe7   :  { %v940_v33 = vpop.f32.mrf.mxu1 }
  0xe8   :  { %v465_v34 = vpack.c.bf16 %v454_v27, %v453_v26  ;;  %v419_v35 = vadd.f32 %v940_v33, %v920_v29  ;;  %v237_v36 = vpop.f32.mrf.mxu0  ;;  %v441_v39 = vadd.f32 %v1193_v32, %v408_v28  ;;  %v459_v47 = vmax.f32 %v443_v42, 0.0 }
  0xe9   :  { %v410_v38 = vpop.f32.mrf.mxu1 }
  0xea   :  { %v444_v40 = vadd.f32 %v1193_v32, %v419_v35  ;;  %v411_v41 = vadd.f32 %v410_v38, %v237_v36  ;;  %957 = vmatprep.mubr.msk.bf16.mxu0 %vm508_vm1, %v465_v34  ;;  %v457_v45 = vmax.f32 %v441_v39, 0.0  ;;  %v646_v36 = vld [vmem:[%s1281_s7] sm:$0x1] }
  0xeb   :  { %958 = vmatmul.mubr.msk.bf16.gmra.mxu0 %vm508_vm1, %v466_v37  ;;  %v648_v37 = vstv %s1282_s8 }
  0xec   :  { %v442_v43 = vadd.f32 %v1193_v32, %v411_v41  ;;  %v460_v44 = vmax.f32 %v444_v40, 0.0 }
  0xee   :  { %v458_v46 = vmax.f32 %v442_v43, 0.0  ;;  %v468_v49 = vpack.c.bf16 %v460_v44, %v459_v47 }
  0xf0   :  { %v467_v48 = vpack.c.bf16 %v458_v46, %v457_v45 }
  0xf2   :  { %961 = vmatprep.mubr.msk.bf16.mxu0 %vm508_vm1, %v467_v48 }
  0xf3   :  { %962 = vmatmul.mubr.msk.bf16.gmra.mxu0 %vm508_vm1, %v468_v49 }
 0x19b   :  { %v1221_v51 = vpop.f32.mrf.mxu0 }
 0x19c   :  { %v576_v28 = vadd.f32 %v1221_v51, %v822_v0 }
 0x19d   :  { %v1223_v52 = vpop.f32.mrf.mxu0 }
 0x19e   :  { %v632_v30 = vmax.f32 %v576_v28, 0.0  ;;  %v568_v33 = vadd.f32 %v822_v0, %v1223_v52 }
 0x19f   :  { %v952_v32 = vpop.f32.mrf.mxu0 }
 0x1a0   :  { %v579_v26 = vadd.f32 %v952_v32, %v822_v0  ;;  %v630_v35 = vmax.f32 %v568_v33, 0.0 }
 0x1a1   :  { %v1225_v53 = vpop.f32.mrf.mxu0 }
 0x1a2   :  { %v633_v29 = vmax.f32 %v579_v26, 0.0  ;;  %v571_v31 = vadd.f32 %v822_v0, %v1225_v53 }
 0x1a3   :  { %v955_v54 = vpop.f32.mrf.mxu0 }
 0x1a4   :  { %v592_v20 = vadd.f32 %v955_v54, %v822_v0  ;;  %v631_v34 = vmax.f32 %v571_v31, 0.0 }
 0x1a5   :  { %v583_v55 = vpop.f32.mrf.mxu0 }
 0x1a6   :  { %v636_v22 = vmax.f32 %v592_v20, 0.0  ;;  %v584_v24 = vadd.f32 %v822_v0, %v583_v55 }
 0x1a7   :  { %v956_v56 = vpop.f32.mrf.mxu0 }
 0x1a8   :  { %v595_v18 = vadd.f32 %v956_v56, %v822_v0  ;;  %v634_v27 = vmax.f32 %v584_v24, 0.0 }
 0x1a9   :  { %v586_v57 = vpop.f32.mrf.mxu0 }
 0x1aa   :  { %v637_v21 = vmax.f32 %v595_v18, 0.0  ;;  %v587_v23 = vadd.f32 %v822_v0, %v586_v57 }
 0x1ab   :  { %v959_v58 = vpop.f32.mrf.mxu0 }
 0x1ac   :  { %v608_v12 = vadd.f32 %v959_v58, %v822_v0  ;;  %v635_v25 = vmax.f32 %v587_v23, 0.0 }
 0x1ad   :  { %v599_v59 = vpop.f32.mrf.mxu0 }
 0x1ae   :  { %v640_v14 = vmax.f32 %v608_v12, 0.0  ;;  %v600_v16 = vadd.f32 %v822_v0, %v599_v59 }
 0x1af   :  { %v960_v60 = vpop.f32.mrf.mxu0 }
 0x1b0   :  { %v611_v10 = vadd.f32 %v960_v60, %v822_v0  ;;  %v638_v19 = vmax.f32 %v600_v16, 0.0 }
 0x1b1   :  { %v602_v61 = vpop.f32.mrf.mxu0 }
 0x1b2   :  { %v641_v13 = vmax.f32 %v611_v10, 0.0  ;;  %v603_v15 = vadd.f32 %v822_v0, %v602_v61 }
 0x1b3   :  { %v963_v62 = vpop.f32.mrf.mxu0 }
 0x1b4   :  { %v624_v3 = vadd.f32 %v963_v62, %v822_v0  ;;  %v639_v17 = vmax.f32 %v603_v15, 0.0 }
 0x1b5   :  { %v615_v63 = vpop.f32.mrf.mxu0 }
 0x1b6   :  { %v644_v6 = vmax.f32 %v624_v3, 0.0  ;;  %v616_v8 = vadd.f32 %v822_v0, %v615_v63 }
 0x1b7   :  { %v964_v1 = vpop.f32.mrf.mxu0 }
 0x1b8   :  { %v627_v2 = vadd.f32 %v964_v1, %v822_v0  ;;  %v642_v11 = vmax.f32 %v616_v8, 0.0 }
 0x1b9   :  { %v618_v5 = vpop.f32.mrf.mxu0 }
 0x1ba   :  { %v645_v4 = vmax.f32 %v627_v2, 0.0  ;;  %v619_v7 = vadd.f32 %v822_v0, %v618_v5 }
 0x1bc   :  { %966 = vmatpush3.xpose.msk.msra.mxu1 %vm127_vm0, %v645_v4  ;;  %v643_v9 = vmax.f32 %v619_v7, 0.0 }
 0x1bd   :  { %967 = vmatprep.subr.mxu1 %v1049_v50 }
 0x1c0   :  { %968 = vmatpush3.xpose.msk.msra.mxu1 %vm127_vm0, %v644_v6 }
 0x1c1   :  { %969 = vmatprep.subr.mxu1 %v1049_v50 }
 0x1c4   :  { %970 = vmatpush3.xpose.msk.msra.mxu1 %vm127_vm0, %v643_v9 }
 0x1c5   :  { %971 = vmatprep.subr.mxu1 %v1049_v50 }
 0x1c8   :  { %972 = vmatpush3.xpose.msk.msra.mxu1 %vm127_vm0, %v642_v11 }
 0x1c9   :  { %973 = vmatprep.subr.mxu1 %v1049_v50 }
 0x1cc   :  { %974 = vmatpush3.xpose.msk.msra.mxu1 %vm127_vm0, %v641_v13 }
 0x1cd   :  { %975 = vmatprep.subr.mxu1 %v1049_v50 }
 0x1d0   :  { %976 = vmatpush3.xpose.msk.msra.mxu1 %vm127_vm0, %v640_v14 }
 0x1d1   :  { %977 = vmatprep.subr.mxu1 %v1049_v50 }
 0x1d4   :  { %978 = vmatpush3.xpose.msk.msra.mxu1 %vm127_vm0, %v639_v17 }
 0x1d5   :  { %979 = vmatprep.subr.mxu1 %v1049_v50 }
 0x1d8   :  { %980 = vmatpush3.xpose.msk.msra.mxu1 %vm127_vm0, %v638_v19 }
 0x1d9   :  { %981 = vmatprep.subr.mxu1 %v1049_v50 }
 0x1dc   :  { %982 = vmatpush3.xpose.msk.msra.mxu1 %vm127_vm0, %v637_v21 }
 0x1dd   :  { %983 = vmatprep.subr.mxu1 %v1049_v50 }
 0x1e0   :  { %984 = vmatpush3.xpose.msk.msra.mxu1 %vm127_vm0, %v636_v22 }
 0x1e1   :  { %985 = vmatprep.subr.mxu1 %v1049_v50 }
 0x1e4   :  { %986 = vmatpush3.xpose.msk.msra.mxu1 %vm127_vm0, %v635_v25 }
 0x1e5   :  { %987 = vmatprep.subr.mxu1 %v1049_v50 }
 0x1e8   :  { %988 = vmatpush3.xpose.msk.msra.mxu1 %vm127_vm0, %v634_v27 }
 0x1e9   :  { %989 = vmatprep.subr.mxu1 %v1049_v50 }
 0x1ec   :  { %990 = vmatpush3.xpose.msk.msra.mxu1 %vm127_vm0, %v633_v29 }
 0x1ed   :  { %991 = vmatprep.subr.mxu1 %v1049_v50 }
 0x1f0   :  { %992 = vmatpush3.xpose.msk.msra.mxu1 %vm127_vm0, %v632_v30 }
 0x1f1   :  { %993 = vmatprep.subr.mxu1 %v1049_v50 }
 0x1f4   :  { %994 = vmatpush3.xpose.msk.msra.mxu1 %vm127_vm0, %v631_v34 }
 0x1f5   :  { %995 = vmatprep.subr.mxu1 %v1049_v50 }
 0x1f8   :  { %996 = vmatpush3.xpose.msk.msra.mxu1 %vm127_vm0, %v630_v35 }
 0x1fb   :  { %998 = vmatmul.mubr.msk.f32.vlgmr.msra.gmra.mxu1 %vm127_vm0, %v646_v36 }
 0x2bb   :  { %v766_v38 = vpop.f32.mrf.mxu1 }
 0x2bc   :  { %v767_v39 = vadd.f32 %v766_v38, %v648_v37 }
 0x2bd   :  { %v999_v40 = vpop.f32.mrf.mxu1 }
 0x2be   :  { %770 = vst [vmem:[#allocation3] sm:$0x1] %v767_v39 }
 0x2bf   :  { %1038 = shalt.err (!%p1035_p4)
}
 0x2c0   :  { %780 = dma.vmem_to_hbm [thread:$0]  %s778_s15, 16, %s1283_s9, [#allocation4]  }
 0x2c1   :  { %1047 = dma.done.wait [#allocation4], 16  }
 0x2c2   :  { %1048 = vsyncadd [#allocation4], 4294967280 }
 0x2c3   :  { %784 = vsyncpa [#allocation4], 1 }

</bundles_post_ra>
